<compile_context>
chip_gen: v7x
topology: tpu7x:2x2x1
jax: 0.10.0
libtpu: 0.0.40
codegen_flags: <defaults>
</compile_context>

<pallas_src>
import functools

import jax
import jax.numpy as jnp
from jax.experimental import pallas as pl
from jax.experimental.pallas import tpu as pltpu

NUM_STATE = 4                                # forward indexes state cols 1, 2, 3
NUM_REF = 2
NUM_CTRL = 2
NUM_FEAT = NUM_STATE + NUM_REF               # 6
HIDDEN = 256
NUM_GAIN = 4                                 # surviving gain-matrix entries
GAIN_COLS = (2, 3, 5, 6)                     # flat indices: (0,2),(0,3),(1,1),(1,2)

DEFAULT_BATCH_TILE = 2048

_GELU_C = 0.7978845608028654                 # sqrt(2/pi)


def _round_up(x, m):
    return (x + m - 1) // m * m


def _choose_tile(B, batch_tile):
    # Balanced tiles (never pad by more than one rounded tile of slack) and
    # >= 2 grid steps when B >= 16 so v7x's two TensorCores both get work.
    min_steps = 2 if B >= 16 else 1
    n = max(pl.cdiv(B, batch_tile), min_steps)
    tile = _round_up(pl.cdiv(B, n), 8)
    n = pl.cdiv(B, tile)
    return tile, n * tile


def _gelu_bf16(x):
    # tanh-form GELU.  tanh goes to the EUP slot; the remaining ~7 VALU ops per
    # element replace the ~20-op erf polynomial.  The result is cast straight to
    # bf16 for the next MXU matmul (no separate conversion pass).
    inner = _GELU_C * (x + 0.044715 * (x * x * x))
    return (0.5 * x * (1.0 + jnp.tanh(inner))).astype(jnp.bfloat16)


def controller_kernel(feat_ref,
                      w1_ref, w2_ref, w3_ref, w4_ref, bias_ref,
                      out_ref,
                      *, acc_min, acc_max, df_min, df_max):
    feat = feat_ref[...]                                           # [T, 6] f32

    b1 = bias_ref[0:1, :]
    b2 = bias_ref[1:2, :]
    b3 = bias_ref[2:3, :]
    b4 = bias_ref[3:4, 0:NUM_GAIN]

    # ---- MLP hot path: bf16 MXU operands, f32 accumulate, f32 elementwise ----
    h = _gelu_bf16(jnp.dot(feat.astype(jnp.bfloat16), w1_ref[...],
                           preferred_element_type=jnp.float32) + b1)
    h = _gelu_bf16(jnp.dot(h, w2_ref[...],
                           preferred_element_type=jnp.float32) + b2)
    h = _gelu_bf16(jnp.dot(h, w3_ref[...],
                           preferred_element_type=jnp.float32) + b3)
    gains = jnp.dot(h, w4_ref[...],
                    preferred_element_type=jnp.float32) + b4        # [T, 4]

    # gains columns are the surviving gain-matrix entries (flat 2, 3, 5, 6):
    #   col0 = gain[0,2]              col1 = gain[0,3] -> -g^2 - 0.6
    #   col2 = gain[1,1] -> -g^2      col3 = gain[1,2]
    # state_error after torch's ref_state construction:
    #   err1 = state[:,1]-ref[:,0], err2 = state[:,2], err3 = state[:,3]-ref[:,1]
    err1 = feat[:, 1:2] - feat[:, 4:5]
    err2 = feat[:, 2:3]
    err3 = feat[:, 3:4] - feat[:, 5:6]

    g03 = -(gains[:, 1:2] * gains[:, 1:2]) - 0.6
    g11 = -(gains[:, 2:3] * gains[:, 2:3])
    c0 = gains[:, 0:1] * err2 + g03 * err3          # control row 0 (pre-tanh)
    c1 = g11 * err1 + gains[:, 3:4] * err2          # control row 1 (pre-tanh)

    out_ref[:, 0:1] = (jnp.tanh(c0) * ((acc_max - acc_min) * 0.5)
                       + (acc_max + acc_min) * 0.5)
    out_ref[:, 1:2] = (jnp.tanh(c1) * ((df_max - df_min) * 0.5)
                       + (df_max + df_min) * 0.5)


def controller_forward(features, packed_params, *, acc_min, acc_max,
                       delta_f_min, delta_f_max,
                       batch_tile=DEFAULT_BATCH_TILE):
    w1, w2, w3, w4, biases = packed_params
    B, F = features.shape
    assert F == NUM_FEAT

    tile, Bp = _choose_tile(B, batch_tile)
    feats_p = features if Bp == B else jnp.pad(features, ((0, Bp - B), (0, 0)))

    kern = functools.partial(controller_kernel,
                             acc_min=float(acc_min), acc_max=float(acc_max),
                             df_min=float(delta_f_min),
                             df_max=float(delta_f_max))

    flops = 2 * Bp * (NUM_FEAT * HIDDEN + 2 * HIDDEN * HIDDEN + HIDDEN * NUM_GAIN)
    transcendentals = Bp * (3 * HIDDEN + 2)          # 1 tanh per GELU elem + 2 tanh
    bytes_accessed = (2 * (w1.size + w2.size + w3.size + w4.size)   # bf16 weights
                      + 4 * biases.size
                      + 4 * Bp * (NUM_FEAT + NUM_CTRL))

    control_p = pl.pallas_call(
        kern,
        out_shape=jax.ShapeDtypeStruct((Bp, NUM_CTRL), jnp.float32),
        grid_spec=pltpu.PrefetchScalarGridSpec(
            num_scalar_prefetch=0,
            grid=(Bp // tile,),
            in_specs=[
                pl.BlockSpec((tile, NUM_FEAT), lambda i: (i, 0)),     # features
                pl.BlockSpec((NUM_FEAT, HIDDEN), lambda i: (0, 0)),   # w1 (resident)
                pl.BlockSpec((HIDDEN, HIDDEN), lambda i: (0, 0)),     # w2 (resident)
                pl.BlockSpec((HIDDEN, HIDDEN), lambda i: (0, 0)),     # w3 (resident)
                pl.BlockSpec((HIDDEN, NUM_GAIN), lambda i: (0, 0)),   # w4 (resident)
                pl.BlockSpec((4, HIDDEN), lambda i: (0, 0)),          # fused biases
            ],
            out_specs=pl.BlockSpec((tile, NUM_CTRL), lambda i: (i, 0)),
        ),
        compiler_params=pltpu.CompilerParams(
            dimension_semantics=("parallel",)),
        cost_estimate=pl.CostEstimate(
            flops=int(flops),
            transcendentals=int(transcendentals),
            bytes_accessed=int(bytes_accessed)),
    )(feats_p, w1, w2, w3, w4, biases)

    # Passthrough outputs come straight from the wrapper (exact copies).
    initial_state = features[:, :NUM_STATE]
    reference = features[:, NUM_STATE:NUM_FEAT]
    return initial_state, control_p[:B], reference


def init_params(key):
    """Deterministic synthetic init mirroring nn.Linear's U(-1/sqrt(fan_in), .)."""
    dims = [(NUM_FEAT, HIDDEN), (HIDDEN, HIDDEN), (HIDDEN, HIDDEN),
            (HIDDEN, NUM_CTRL * NUM_STATE)]
    params = []
    for fan_in, fan_out in dims:
        key, kw, kb = jax.random.split(key, 3)
        bound = 1.0 / (fan_in ** 0.5)
        w = jax.random.uniform(kw, (fan_in, fan_out), jnp.float32, -bound, bound)
        b = jax.random.uniform(kb, (fan_out,), jnp.float32, -bound, bound)
        params.append((w, b))
    return params


def pack_params(params):
    """-> (w1..w4 bf16 [in,out]; w4/b4 sliced to GAIN_COLS; fused f32 bias [4, HIDDEN])."""
    (w1, b1), (w2, b2), (w3, b3), (w4, b4) = params
    cols = jnp.asarray(GAIN_COLS)
    ws = (w1.astype(jnp.bfloat16), w2.astype(jnp.bfloat16),
          w3.astype(jnp.bfloat16), w4[:, cols].astype(jnp.bfloat16))
    biases = jnp.zeros((4, HIDDEN), jnp.float32)
    biases = biases.at[0, :].set(b1)
    biases = biases.at[1, :].set(b2)
    biases = biases.at[2, :].set(b3)
    biases = biases.at[3, :NUM_GAIN].set(b4[cols])
    return (*ws, biases)


def reference_forward(features, params, *, acc_min, acc_max, delta_f_min,
                      delta_f_max, match_kernel_precision=False):
    """Pure-JAX mirror of the PyTorch forward (torch-style masking / bmm)."""
    h = features
    out = None
    for li, (w, b) in enumerate(params):
        if match_kernel_precision:
            z = jnp.dot(h.astype(jnp.bfloat16), w.astype(jnp.bfloat16),
                        preferred_element_type=jnp.float32) + b
        else:
            z = jnp.dot(h, w, preferred_element_type=jnp.float32) + b
        if li < 3:
            if match_kernel_precision:
                h = 0.5 * z * (1.0 + jnp.tanh(_GELU_C * (z + 0.044715 * z ** 3)))
            else:
                h = jax.nn.gelu(z, approximate=False)
        else:
            out = z
    state = features[:, :NUM_STATE]
    ref = features[:, NUM_STATE:NUM_FEAT]
    ref_state = jnp.zeros_like(state).at[:, 1].set(ref[:, 0]).at[:, 3].set(ref[:, 1])
    err = state - ref_state
    gain = out.reshape(-1, NUM_CTRL, NUM_STATE)
    masked = jnp.zeros_like(gain)
    masked = masked.at[:, 0, 2].set(gain[:, 0, 2])
    masked = masked.at[:, 0, 3].set(-gain[:, 0, 3] ** 2 - 0.6)
    masked = masked.at[:, 1, 1].set(-gain[:, 1, 1] ** 2)
    masked = masked.at[:, 1, 2].set(gain[:, 1, 2])
    ctrl = jnp.tanh(jnp.einsum('bcs,bs->bc', masked, err))
    acc = ctrl[:, 0:1] * (acc_max - acc_min) / 2 + (acc_max + acc_min) / 2
    df = ctrl[:, 1:2] * (delta_f_max - delta_f_min) / 2 + (delta_f_max + delta_f_min) / 2
    return state, jnp.concatenate([acc, df], axis=-1), ref


if __name__ == "__main__":
    key = jax.random.PRNGKey(0)
    key, kf = jax.random.split(key)
    params = init_params(key)
    packed = pack_params(params)
    bounds = dict(acc_min=-3.0, acc_max=3.0, delta_f_min=-0.5, delta_f_max=0.5)

    for B in (8, 40):   # B=40 exercises padding + a 2-step ("parallel") grid
        feats = jax.random.normal(jax.random.fold_in(kf, B), (B, NUM_FEAT),
                                  jnp.float32)
        state, control, ref = controller_forward(feats, packed, **bounds)
        jax.block_until_ready((state, control, ref))

        assert state.shape == (B, NUM_STATE)
        assert control.shape == (B, NUM_CTRL)
        assert ref.shape == (B, NUM_REF)
        # Passthrough outputs are exact copies of the feature slices.
        assert bool(jnp.all(state == feats[:, :NUM_STATE]))
        assert bool(jnp.all(ref == feats[:, NUM_STATE:NUM_FEAT]))
        assert bool(jnp.all(jnp.isfinite(control)))

        # Structural check: matched-precision (bf16 matmul + tanh GELU) reference.
        _, ctrl_match, _ = reference_forward(
            feats, params, **bounds, match_kernel_precision=True)
        assert bool(jnp.allclose(control, ctrl_match, atol=2e-3, rtol=2e-3))

        # Loose check vs. the fp32 / exact-erf PyTorch semantics.
        _, ctrl_exact, _ = reference_forward(
            feats, params, **bounds, match_kernel_precision=False)
        assert bool(jnp.allclose(control, ctrl_exact, atol=1e-1, rtol=1e-1))

    print("KERNEL_OK")
</pallas_src>

<mosaic_0001>
module attributes {stable_mosaic.version = 11 : i64} {
  func.func @controller_kernel(%arg0: i32, %arg1: memref<8x6xf32, #tpu.memory_space<vmem>>, %arg2: memref<6x256xbf16, #tpu.memory_space<vmem>>, %arg3: memref<256x256xbf16, #tpu.memory_space<vmem>>, %arg4: memref<256x256xbf16, #tpu.memory_space<vmem>>, %arg5: memref<256x4xbf16, #tpu.memory_space<vmem>>, %arg6: memref<4x256xf32, #tpu.memory_space<vmem>>, %arg7: memref<8x2xf32, #tpu.memory_space<vmem>>) attributes {dimension_semantics = [#tpu.dimension_semantics<parallel>], iteration_bounds = array<i64: 1>, scalar_prefetch = 0 : i64, scratch_operands = 0 : i64, tpu.core_type = #tpu.core_type<tc>, window_params = [{transform_indices = @transform_0, window_bounds = array<i64: 8, 6>}, {pipeline_mode = #tpu.pipeline_mode<synchronous>, transform_indices = @transform_1, window_bounds = array<i64: 6, 256>}, {pipeline_mode = #tpu.pipeline_mode<synchronous>, transform_indices = @transform_2, window_bounds = array<i64: 256, 256>}, {pipeline_mode = #tpu.pipeline_mode<synchronous>, transform_indices = @transform_3, window_bounds = array<i64: 256, 256>}, {pipeline_mode = #tpu.pipeline_mode<synchronous>, transform_indices = @transform_4, window_bounds = array<i64: 256, 4>}, {pipeline_mode = #tpu.pipeline_mode<synchronous>, transform_indices = @transform_5, window_bounds = array<i64: 4, 256>}, {transform_indices = @transform_6, window_bounds = array<i64: 8, 2>}]} {
    %c0 = arith.constant 0 : index
    %c0_0 = arith.constant 0 : index
    %0 = vector.load %arg1[%c0, %c0_0] : memref<8x6xf32, #tpu.memory_space<vmem>>, vector<8x6xf32>
    %c0_1 = arith.constant 0 : index
    %c0_2 = arith.constant 0 : index
    %1 = vector.load %arg6[%c0_1, %c0_2] : memref<4x256xf32, #tpu.memory_space<vmem>>, vector<1x256xf32>
    %c1 = arith.constant 1 : index
    %c0_3 = arith.constant 0 : index
    %2 = vector.load %arg6[%c1, %c0_3] : memref<4x256xf32, #tpu.memory_space<vmem>>, vector<1x256xf32>
    %c2 = arith.constant 2 : index
    %c0_4 = arith.constant 0 : index
    %3 = vector.load %arg6[%c2, %c0_4] : memref<4x256xf32, #tpu.memory_space<vmem>>, vector<1x256xf32>
    %c3 = arith.constant 3 : index
    %c0_5 = arith.constant 0 : index
    %4 = vector.load %arg6[%c3, %c0_5] : memref<4x256xf32, #tpu.memory_space<vmem>>, vector<1x4xf32>
    %5 = arith.truncf %0 : vector<8x6xf32> to vector<8x6xbf16>
    %c0_6 = arith.constant 0 : index
    %c0_7 = arith.constant 0 : index
    %6 = vector.load %arg2[%c0_6, %c0_7] : memref<6x256xbf16, #tpu.memory_space<vmem>>, vector<6x256xbf16>
    %cst = arith.constant dense<0.000000e+00> : vector<8x256xf32>
    %7 = tpu.matmul %5, %6, %cst {dimension_numbers = #tpu.dot_dimension_numbers<[1], [0], [0], [1], [0, 0, 1, 1], [], []>} : vector<8x6xbf16>, vector<6x256xbf16>, vector<8x256xf32> -> vector<8x256xf32>
    %8 = vector.broadcast %1 : vector<1x256xf32> to vector<8x256xf32>
    %9 = arith.addf %7, %8 : vector<8x256xf32>
    %10 = arith.mulf %9, %9 : vector<8x256xf32>
    %11 = arith.mulf %10, %9 : vector<8x256xf32>
    %cst_8 = arith.constant 4.471500e-02 : f32
    %12 = vector.broadcast %cst_8 : f32 to vector<8x256xf32>
    %13 = arith.mulf %12, %11 : vector<8x256xf32>
    %14 = arith.addf %9, %13 : vector<8x256xf32>
    %cst_9 = arith.constant 0.797884583 : f32
    %15 = vector.broadcast %cst_9 : f32 to vector<8x256xf32>
    %16 = arith.mulf %15, %14 : vector<8x256xf32>
    %cst_10 = arith.constant 5.000000e-01 : f32
    %17 = vector.broadcast %cst_10 : f32 to vector<8x256xf32>
    %18 = arith.mulf %17, %9 : vector<8x256xf32>
    %19 = math.tanh %16 : vector<8x256xf32>
    %cst_11 = arith.constant 1.000000e+00 : f32
    %20 = vector.broadcast %cst_11 : f32 to vector<8x256xf32>
    %21 = arith.addf %20, %19 : vector<8x256xf32>
    %22 = arith.mulf %18, %21 : vector<8x256xf32>
    %23 = arith.truncf %22 : vector<8x256xf32> to vector<8x256xbf16>
    %c0_12 = arith.constant 0 : index
    %c0_13 = arith.constant 0 : index
    %24 = vector.load %arg3[%c0_12, %c0_13] : memref<256x256xbf16, #tpu.memory_space<vmem>>, vector<256x256xbf16>
    %cst_14 = arith.constant dense<0.000000e+00> : vector<8x256xf32>
    %25 = tpu.matmul %23, %24, %cst_14 {dimension_numbers = #tpu.dot_dimension_numbers<[1], [0], [0], [1], [0, 0, 1, 1], [], []>} : vector<8x256xbf16>, vector<256x256xbf16>, vector<8x256xf32> -> vector<8x256xf32>
    %26 = vector.broadcast %2 : vector<1x256xf32> to vector<8x256xf32>
    %27 = arith.addf %25, %26 : vector<8x256xf32>
    %28 = arith.mulf %27, %27 : vector<8x256xf32>
    %29 = arith.mulf %28, %27 : vector<8x256xf32>
    %cst_15 = arith.constant 4.471500e-02 : f32
    %30 = vector.broadcast %cst_15 : f32 to vector<8x256xf32>
    %31 = arith.mulf %30, %29 : vector<8x256xf32>
    %32 = arith.addf %27, %31 : vector<8x256xf32>
    %cst_16 = arith.constant 0.797884583 : f32
    %33 = vector.broadcast %cst_16 : f32 to vector<8x256xf32>
    %34 = arith.mulf %33, %32 : vector<8x256xf32>
    %cst_17 = arith.constant 5.000000e-01 : f32
    %35 = vector.broadcast %cst_17 : f32 to vector<8x256xf32>
    %36 = arith.mulf %35, %27 : vector<8x256xf32>
    %37 = math.tanh %34 : vector<8x256xf32>
    %cst_18 = arith.constant 1.000000e+00 : f32
    %38 = vector.broadcast %cst_18 : f32 to vector<8x256xf32>
    %39 = arith.addf %38, %37 : vector<8x256xf32>
    %40 = arith.mulf %36, %39 : vector<8x256xf32>
    %41 = arith.truncf %40 : vector<8x256xf32> to vector<8x256xbf16>
    %c0_19 = arith.constant 0 : index
    %c0_20 = arith.constant 0 : index
    %42 = vector.load %arg4[%c0_19, %c0_20] : memref<256x256xbf16, #tpu.memory_space<vmem>>, vector<256x256xbf16>
    %cst_21 = arith.constant dense<0.000000e+00> : vector<8x256xf32>
    %43 = tpu.matmul %41, %42, %cst_21 {dimension_numbers = #tpu.dot_dimension_numbers<[1], [0], [0], [1], [0, 0, 1, 1], [], []>} : vector<8x256xbf16>, vector<256x256xbf16>, vector<8x256xf32> -> vector<8x256xf32>
    %44 = vector.broadcast %3 : vector<1x256xf32> to vector<8x256xf32>
    %45 = arith.addf %43, %44 : vector<8x256xf32>
    %46 = arith.mulf %45, %45 : vector<8x256xf32>
    %47 = arith.mulf %46, %45 : vector<8x256xf32>
    %cst_22 = arith.constant 4.471500e-02 : f32
    %48 = vector.broadcast %cst_22 : f32 to vector<8x256xf32>
    %49 = arith.mulf %48, %47 : vector<8x256xf32>
    %50 = arith.addf %45, %49 : vector<8x256xf32>
    %cst_23 = arith.constant 0.797884583 : f32
    %51 = vector.broadcast %cst_23 : f32 to vector<8x256xf32>
    %52 = arith.mulf %51, %50 : vector<8x256xf32>
    %cst_24 = arith.constant 5.000000e-01 : f32
    %53 = vector.broadcast %cst_24 : f32 to vector<8x256xf32>
    %54 = arith.mulf %53, %45 : vector<8x256xf32>
    %55 = math.tanh %52 : vector<8x256xf32>
    %cst_25 = arith.constant 1.000000e+00 : f32
    %56 = vector.broadcast %cst_25 : f32 to vector<8x256xf32>
    %57 = arith.addf %56, %55 : vector<8x256xf32>
    %58 = arith.mulf %54, %57 : vector<8x256xf32>
    %59 = arith.truncf %58 : vector<8x256xf32> to vector<8x256xbf16>
    %c0_26 = arith.constant 0 : index
    %c0_27 = arith.constant 0 : index
    %60 = vector.load %arg5[%c0_26, %c0_27] : memref<256x4xbf16, #tpu.memory_space<vmem>>, vector<256x4xbf16>
    %cst_28 = arith.constant dense<0.000000e+00> : vector<8x4xf32>
    %61 = tpu.matmul %59, %60, %cst_28 {dimension_numbers = #tpu.dot_dimension_numbers<[1], [0], [0], [1], [0, 0, 1, 1], [], []>} : vector<8x256xbf16>, vector<256x4xbf16>, vector<8x4xf32> -> vector<8x4xf32>
    %62 = vector.broadcast %4 : vector<1x4xf32> to vector<8x4xf32>
    %63 = arith.addf %61, %62 : vector<8x4xf32>
    %64 = vector.extract_strided_slice %0 {offsets = [0, 1], sizes = [8, 1], strides = [1, 1]} : vector<8x6xf32> to vector<8x1xf32>
    %65 = vector.extract_strided_slice %0 {offsets = [0, 4], sizes = [8, 1], strides = [1, 1]} : vector<8x6xf32> to vector<8x1xf32>
    %66 = arith.subf %64, %65 : vector<8x1xf32>
    %67 = vector.extract_strided_slice %0 {offsets = [0, 2], sizes = [8, 1], strides = [1, 1]} : vector<8x6xf32> to vector<8x1xf32>
    %68 = vector.extract_strided_slice %0 {offsets = [0, 3], sizes = [8, 1], strides = [1, 1]} : vector<8x6xf32> to vector<8x1xf32>
    %69 = vector.extract_strided_slice %0 {offsets = [0, 5], sizes = [8, 1], strides = [1, 1]} : vector<8x6xf32> to vector<8x1xf32>
    %70 = arith.subf %68, %69 : vector<8x1xf32>
    %71 = vector.extract_strided_slice %63 {offsets = [0, 1], sizes = [8, 1], strides = [1, 1]} : vector<8x4xf32> to vector<8x1xf32>
    %72 = vector.extract_strided_slice %63 {offsets = [0, 1], sizes = [8, 1], strides = [1, 1]} : vector<8x4xf32> to vector<8x1xf32>
    %73 = arith.mulf %71, %72 : vector<8x1xf32>
    %cst_29 = arith.constant 0.000000e+00 : f32
    %74 = vector.broadcast %cst_29 : f32 to vector<8x1xf32>
    %75 = arith.subf %74, %73 : vector<8x1xf32>
    %cst_30 = arith.constant 6.000000e-01 : f32
    %76 = vector.broadcast %cst_30 : f32 to vector<8x1xf32>
    %77 = arith.subf %75, %76 : vector<8x1xf32>
    %78 = vector.extract_strided_slice %63 {offsets = [0, 2], sizes = [8, 1], strides = [1, 1]} : vector<8x4xf32> to vector<8x1xf32>
    %79 = vector.extract_strided_slice %63 {offsets = [0, 2], sizes = [8, 1], strides = [1, 1]} : vector<8x4xf32> to vector<8x1xf32>
    %80 = arith.mulf %78, %79 : vector<8x1xf32>
    %cst_31 = arith.constant 0.000000e+00 : f32
    %81 = vector.broadcast %cst_31 : f32 to vector<8x1xf32>
    %82 = arith.subf %81, %80 : vector<8x1xf32>
    %83 = vector.extract_strided_slice %63 {offsets = [0, 0], sizes = [8, 1], strides = [1, 1]} : vector<8x4xf32> to vector<8x1xf32>
    %84 = arith.mulf %83, %67 : vector<8x1xf32>
    %85 = arith.mulf %77, %70 : vector<8x1xf32>
    %86 = arith.addf %84, %85 : vector<8x1xf32>
    %87 = arith.mulf %82, %66 : vector<8x1xf32>
    %88 = vector.extract_strided_slice %63 {offsets = [0, 3], sizes = [8, 1], strides = [1, 1]} : vector<8x4xf32> to vector<8x1xf32>
    %89 = arith.mulf %88, %67 : vector<8x1xf32>
    %90 = arith.addf %87, %89 : vector<8x1xf32>
    %91 = math.tanh %86 : vector<8x1xf32>
    %cst_32 = arith.constant 3.000000e+00 : f32
    %92 = vector.broadcast %cst_32 : f32 to vector<8x1xf32>
    %93 = arith.mulf %91, %92 : vector<8x1xf32>
    %cst_33 = arith.constant 0.000000e+00 : f32
    %94 = vector.broadcast %cst_33 : f32 to vector<8x1xf32>
    %95 = arith.addf %93, %94 : vector<8x1xf32>
    %c0_34 = arith.constant 0 : index
    %c0_35 = arith.constant 0 : index
    %96 = vector.load %arg7[%c0_34, %c0_35] : memref<8x2xf32, #tpu.memory_space<vmem>>, vector<8x1xf32>
    tpu.vector_store %arg7[%c0_34, %c0_35], %95 {strides = array<i32>} : memref<8x2xf32, #tpu.memory_space<vmem>>, vector<8x1xf32>,
    %97 = math.tanh %90 : vector<8x1xf32>
    %cst_36 = arith.constant 5.000000e-01 : f32
    %98 = vector.broadcast %cst_36 : f32 to vector<8x1xf32>
    %99 = arith.mulf %97, %98 : vector<8x1xf32>
    %cst_37 = arith.constant 0.000000e+00 : f32
    %100 = vector.broadcast %cst_37 : f32 to vector<8x1xf32>
    %101 = arith.addf %99, %100 : vector<8x1xf32>
    %c0_38 = arith.constant 0 : index
    %c1_39 = arith.constant 1 : index
    %102 = vector.load %arg7[%c0_38, %c1_39] : memref<8x2xf32, #tpu.memory_space<vmem>>, vector<8x1xf32>
    tpu.vector_store %arg7[%c0_38, %c1_39], %101 {strides = array<i32>} : memref<8x2xf32, #tpu.memory_space<vmem>>, vector<8x1xf32>,
    return
  }
  func.func @transform_0(%arg0: i32) -> (i32, i32) {
    %c0_i32 = arith.constant 0 : i32
    %c0_i32_0 = arith.constant 0 : i32
    return %arg0, %c0_i32 : i32, i32
  }
  func.func @transform_1(%arg0: i32) -> (i32, i32) {
    %c0_i32 = arith.constant 0 : i32
    %c0_i32_0 = arith.constant 0 : i32
    %c0_i32_1 = arith.constant 0 : i32
    return %c0_i32, %c0_i32_0 : i32, i32
  }
  func.func @transform_2(%arg0: i32) -> (i32, i32) {
    %c0_i32 = arith.constant 0 : i32
    %c0_i32_0 = arith.constant 0 : i32
    %c0_i32_1 = arith.constant 0 : i32
    return %c0_i32, %c0_i32_0 : i32, i32
  }
  func.func @transform_3(%arg0: i32) -> (i32, i32) {
    %c0_i32 = arith.constant 0 : i32
    %c0_i32_0 = arith.constant 0 : i32
    %c0_i32_1 = arith.constant 0 : i32
    return %c0_i32, %c0_i32_0 : i32, i32
  }
  func.func @transform_4(%arg0: i32) -> (i32, i32) {
    %c0_i32 = arith.constant 0 : i32
    %c0_i32_0 = arith.constant 0 : i32
    %c0_i32_1 = arith.constant 0 : i32
    return %c0_i32, %c0_i32_0 : i32, i32
  }
  func.func @transform_5(%arg0: i32) -> (i32, i32) {
    %c0_i32 = arith.constant 0 : i32
    %c0_i32_0 = arith.constant 0 : i32
    %c0_i32_1 = arith.constant 0 : i32
    return %c0_i32, %c0_i32_0 : i32, i32
  }
  func.func @transform_6(%arg0: i32) -> (i32, i32) {
    %c0_i32 = arith.constant 0 : i32
    %c0_i32_0 = arith.constant 0 : i32
    return %arg0, %c0_i32 : i32, i32
  }
}

</mosaic_0001>

<bundles_post_ra>
// kernel: tpu_custom_call.1
= control target key start
LH: loop header
LB: loop body
LE: loop exit
PB: predicated region body
PF: predicated region fallthrough
CT: control target
= control target key end

     0   :  { %11 = vsyncpa [#allocation3], 0  ;;  %s1364_s0 = inlined_call_operand.vmem [shape: f32[8,6], index: 0, kind: input, shape index: {}]   ;;  %s1365_s1 = inlined_call_operand.vmem [shape: bf16[6,256], index: 1, kind: input, shape index: {}]   ;;  %s1366_s2 = inlined_call_operand.hbm [shape: bf16[256,256], index: 2, kind: input, shape index: {}]   ;;  %s1367_s3 = inlined_call_operand.hbm [shape: bf16[256,256], index: 3, kind: input, shape index: {}]   ;;  %s1368_s4 = inlined_call_operand.vmem [shape: bf16[256,4], index: 4, kind: input, shape index: {}]   ;;  %s1369_s5 = inlined_call_operand.vmem [shape: f32[4,256], index: 5, kind: input, shape index: {}]   ;;  %s1370_s6 = inlined_call_operand.vmem [shape: f32[8,2], index: 6, kind: output, shape index: {}]  }
   0x1   :  { %12 = vsyncpa [#allocation5], 0  ;;  %s1203_s21 = smov [#allocation2]   ;;  %s1155_s25 = scalar_lea.hbm %s1366_s2, 4096 }
   0x2   :  { %s22_s22 = sshll.u32 %s1203_s21, 4  ;;  %p1156_p0 = scmp.ne.s32.totalorder %s1366_s2, %s1155_s25  ;;  %s23_s22 = int_to_ptr.vmem [resolvable:$true] %s22_s22 }
   0x3   :  { %p1159_p1 = scmp.lt.u32.totalorder %s1155_s25, %s1366_s2 }
   0x5   :  { %p1161_p2 = pnand %p1159_p1, %p1156_p0 }
   0x7   :  { %1164 = shalt.err (!%p1161_p2)
}
   0x8   :  { %s1165_s30 = scalar_lea.vmem %s23_s22, 4096  ;;  %p1170_p4 = scmp.lt.s32.totalorder %s23_s22, %s23_s22 }
   0x9   :  { %p1166_p3 = scmp.ne.s32.totalorder %s23_s22, %s1165_s30  ;;  %p1171_p5 = scmp.lt.s32.totalorder %s1165_s30, %s1165_s30 }
   0xb   :  { %p1172_p6 = por %p1171_p5, %p1170_p4 }
   0xd   :  { %p1173_p7 = pnand %p1172_p6, %p1166_p3 }
   0xf   :  { %1176 = shalt.err (!%p1173_p7)
}
  0x10   :  { %s1204_s7 = smov 128   ;;  %s1205_s8 = smov 8  }
  0x11   :  { %28 = dma.hbm_to_vmem [thread:$0]  %s1366_s2, 4096, %s23_s22, [#allocation3], %s1204_s7, %s1204_s7, %s1205_s8  }
  0x12   :  { %s1206_s11 = smov [#allocation4]   ;;  %s1177_s15 = scalar_lea.hbm %s1367_s3, 4096 }
  0x13   :  { %s34_s12 = sshll.u32 %s1206_s11, 4  ;;  %p1178_p8 = scmp.ne.s32.totalorder %s1367_s3, %s1177_s15  ;;  %s35_s12 = int_to_ptr.vmem [resolvable:$true] %s34_s12 }
  0x14   :  { %p1181_p9 = scmp.lt.u32.totalorder %s1177_s15, %s1367_s3 }
  0x16   :  { %p1183_p10 = pnand %p1181_p9, %p1178_p8 }
  0x18   :  { %1186 = shalt.err (!%p1183_p10)
}
  0x19   :  { %s1187_s20 = scalar_lea.vmem %s35_s12, 4096  ;;  %p1192_p12 = scmp.lt.s32.totalorder %s35_s12, %s35_s12 }
  0x1a   :  { %p1188_p11 = scmp.ne.s32.totalorder %s35_s12, %s1187_s20  ;;  %p1193_p13 = scmp.lt.s32.totalorder %s1187_s20, %s1187_s20 }
  0x1c   :  { %p1194_p0 = por %p1193_p13, %p1192_p12 }
  0x1e   :  { %p1195_p1 = pnand %p1194_p0, %p1188_p11 }
  0x20   :  { %1198 = shalt.err (!%p1195_p1)
}
  0x21   :  { %40 = dma.hbm_to_vmem [thread:$0]  %s1367_s3, 4096, %s35_s12, [#allocation5], %s1204_s7, %s1204_s7, %s1205_s8  }
  0x22   :  { %1199 = dma.done.wait [#allocation3], 4096  }
  0x23   :  { %1200 = vsyncadd [#allocation3], 4294963200 }
  0x24   :  { %1201 = dma.done.wait [#allocation5], 4096  }
  0x25   :  { %1202 = vsyncadd [#allocation5], 4294963200  ;;  %v1207_v0 = vmov 0   ;;  %v60_v1 = vld [vmem:[%s1365_s1] sm:$0x77]  ;;  %vm81_vm0 = vcmask 1042432   ;;  %v62_v55 = vlaneseq }
  0x26   :  { %120 = vmatprep.mubr.bf16.mxu0 %v1207_v0  ;;  %v1277_v2 = vld [vmem:[%s1364_s0] sm:$0xff]  ;;  %v909_v3 = vcombine.high %v60_v1, %v60_v1  ;;  %v908_v4 = vcombine.low %v60_v1, %v60_v1  ;;  %v1030_v7 = vld [vmem:[#allocation2 + $0x14] ss:$8 sps:$4 sm:$0xff]   ;;  %vm77_vm1 = vcmask 48128   ;;  %v1032_v10 = vld [vmem:[#allocation2 + $0x10] ss:$8 sps:$4 sm:$0xff]  }
  0x27   :  { %v1027_v5 = vld [vmem:[#allocation2 + $0x4] ss:$8 sps:$4 sm:$0xff]   ;;  %v1029_v6 = vld [vmem:[#allocation2] ss:$8 sps:$4 sm:$0xff]   ;;  %v59_v9 = vpack.c.bf16 %v1277_v2, %v1277_v2  ;;  %v1036_v13 = vld [vmem:[#allocation2 + $0x34] ss:$8 sps:$4 sm:$0xff]  }
  0x28   :  { %910 = vmatprep.subr.msk.bf16.mxu0 %vm81_vm0, %v909_v3  ;;  %v83_v8 = vsel %vm81_vm0, %v908_v4, 0  ;;  %352 = vmatprep.subr.bf16.mxu1 %v1027_v5  ;;  %v1033_v11 = vld [vmem:[#allocation2 + $0x24] ss:$8 sps:$4 sm:$0xff]   ;;  %v1035_v12 = vld [vmem:[#allocation2 + $0x20] ss:$8 sps:$4 sm:$0xff]   ;;  %v63_v56 = vshrl.u32 %v62_v55, 7 }
  0x29   :  { %89 = vmatpush1.bf16.msra.mxu0 %v83_v8  ;;  %353 = vmatpush1.bf16.msra.mxu1 %v1029_v6  ;;  %v1038_v14 = vld [vmem:[#allocation2 + $0x30] ss:$8 sps:$4 sm:$0xff]   ;;  %v1039_v15 = vld [vmem:[#allocation2 + $0x44] ss:$8 sps:$4 sm:$0xff]   ;;  %v1041_v16 = vld [vmem:[#allocation2 + $0x40] ss:$8 sps:$4 sm:$0xff]  }
  0x2a   :  { %354 = vmatprep.subr.bf16.mxu1 %v1030_v7  ;;  %v1042_v17 = vld [vmem:[#allocation2 + $0x54] ss:$8 sps:$4 sm:$0xff]   ;;  %v1044_v18 = vld [vmem:[#allocation2 + $0x50] ss:$8 sps:$4 sm:$0xff]   ;;  %v1045_v19 = vld [vmem:[#allocation2 + $0x64] ss:$8 sps:$4 sm:$0xff]  }
  0x2b   :  { %v1047_v20 = vld [vmem:[#allocation2 + $0x60] ss:$8 sps:$4 sm:$0xff]   ;;  %v1048_v21 = vld [vmem:[#allocation2 + $0x74] ss:$8 sps:$4 sm:$0xff]   ;;  %v1050_v22 = vld [vmem:[#allocation2 + $0x70] ss:$8 sps:$4 sm:$0xff]  }
  0x2c   :  { %911 = vmatmul.mubr.msk.bf16.vlgmr.msra.gmra.mrb[0].mxu0 %vm77_vm1, %v59_v9  ;;  %v1051_v23 = vld [vmem:[#allocation2 + $0x84] ss:$8 sps:$4 sm:$0xff]   ;;  %v1053_v24 = vld [vmem:[#allocation2 + $0x80] ss:$8 sps:$4 sm:$0xff]   ;;  %v1054_v25 = vld [vmem:[#allocation2 + $0x94] ss:$8 sps:$4 sm:$0xff]  }
  0x2d   :  { %355 = vmatpush1.bf16.msra.mxu1 %v1032_v10  ;;  %v1056_v26 = vld [vmem:[#allocation2 + $0x90] ss:$8 sps:$4 sm:$0xff]   ;;  %v1057_v27 = vld [vmem:[#allocation2 + $0xa4] ss:$8 sps:$4 sm:$0xff]   ;;  %v1059_v28 = vld [vmem:[#allocation2 + $0xa0] ss:$8 sps:$4 sm:$0xff]  }
  0x2e   :  { %356 = vmatprep.subr.bf16.mxu1 %v1033_v11  ;;  %v1060_v29 = vld [vmem:[#allocation2 + $0xb4] ss:$8 sps:$4 sm:$0xff]   ;;  %v1062_v30 = vld [vmem:[#allocation2 + $0xb0] ss:$8 sps:$4 sm:$0xff]   ;;  %v1063_v31 = vld [vmem:[#allocation2 + $0xc4] ss:$8 sps:$4 sm:$0xff]  }
  0x2f   :  { %v1065_v32 = vld [vmem:[#allocation2 + $0xc0] ss:$8 sps:$4 sm:$0xff]   ;;  %v1066_v33 = vld [vmem:[#allocation2 + $0xd4] ss:$8 sps:$4 sm:$0xff]   ;;  %v1068_v34 = vld [vmem:[#allocation2 + $0xd0] ss:$8 sps:$4 sm:$0xff]  }
  0x30   :  { %v1069_v35 = vld [vmem:[#allocation2 + $0xe4] ss:$8 sps:$4 sm:$0xff]   ;;  %v1071_v36 = vld [vmem:[#allocation2 + $0xe0] ss:$8 sps:$4 sm:$0xff]   ;;  %v1072_v37 = vld [vmem:[#allocation2 + $0xf4] ss:$8 sps:$4 sm:$0xff]  }
  0x31   :  { %357 = vmatpush1.bf16.msra.mxu1 %v1035_v12  ;;  %v1074_v38 = vld [vmem:[#allocation2 + $0xf0] ss:$8 sps:$4 sm:$0xff]   ;;  %v1075_v39 = vld [vmem:[#allocation4] ss:$8 sps:$4 sm:$0xff]   ;;  %v1077_v40 = vld [vmem:[#allocation4 + $0x4] ss:$8 sps:$4 sm:$0xff]  }
  0x32   :  { %358 = vmatprep.subr.bf16.mxu1 %v1036_v13  ;;  %v1080_v41 = vld [vmem:[#allocation4 + $0x14] ss:$8 sps:$4 sm:$0xff]   ;;  %616 = vmatprep.subr.bf16.mxu0 %v1077_v40  ;;  %v1078_v42 = vld [vmem:[#allocation4 + $0x10] ss:$8 sps:$4 sm:$0xff]   ;;  %v1083_v43 = vld [vmem:[#allocation4 + $0x24] ss:$8 sps:$4 sm:$0xff]  }
  0x33   :  { %617 = vmatpush1.bf16.msra.mxu0 %v1075_v39  ;;  %v1081_v44 = vld [vmem:[#allocation4 + $0x20] ss:$8 sps:$4 sm:$0xff]   ;;  %v1086_v45 = vld [vmem:[#allocation4 + $0x34] ss:$8 sps:$4 sm:$0xff]   ;;  %v1084_v46 = vld [vmem:[#allocation4 + $0x30] ss:$8 sps:$4 sm:$0xff]  }
  0x34   :  { %618 = vmatprep.subr.bf16.mxu0 %v1080_v41  ;;  %v1089_v47 = vld [vmem:[#allocation4 + $0x44] ss:$8 sps:$4 sm:$0xff]   ;;  %v1087_v48 = vld [vmem:[#allocation4 + $0x40] ss:$8 sps:$4 sm:$0xff]   ;;  %v1092_v49 = vld [vmem:[#allocation4 + $0x54] ss:$8 sps:$4 sm:$0xff]  }
  0x35   :  { %359 = vmatpush1.bf16.msra.mxu1 %v1038_v14  ;;  %v1090_v50 = vld [vmem:[#allocation4 + $0x50] ss:$8 sps:$4 sm:$0xff]   ;;  %v1095_v51 = vld [vmem:[#allocation4 + $0x64] ss:$8 sps:$4 sm:$0xff]   ;;  %v1093_v52 = vld [vmem:[#allocation4 + $0x60] ss:$8 sps:$4 sm:$0xff]  }
  0x36   :  { %360 = vmatprep.subr.bf16.mxu1 %v1039_v15  ;;  %v1098_v53 = vld [vmem:[#allocation4 + $0x74] ss:$8 sps:$4 sm:$0xff]   ;;  %v1096_v54 = vld [vmem:[#allocation4 + $0x70] ss:$8 sps:$4 sm:$0xff]   ;;  %v1281_v57 = vsub.s32 0, %v63_v56  ;;  %v1286_v59 = vsub.s32 1, %v63_v56 }
  0x37   :  { %619 = vmatpush1.bf16.msra.mxu0 %v1078_v42  ;;  %v53_v58 = vld [vmem:[%s1369_s5] ss:$4 sm:$0x3]  ;;  %v1122_v39 = vld [vmem:[#allocation4 + $0xf4] ss:$8 sps:$4 sm:$0xff]   ;;  %s1208_s22 = smov 126  }
  0x38   :  { %620 = vmatprep.subr.bf16.mxu0 %v1083_v43  ;;  %v65_v60 = vrot.slane %v53_v58, %v1281_v57  ;;  %v69_v61 = vrot.slane %v53_v58, %v1286_v59  ;;  %v1120_v40 = vld [vmem:[#allocation4 + $0xf0] ss:$8 sps:$4 sm:$0xff]   ;;  %v906_v41 = vld [vmem:[%s1369_s5 + $0x1] ss:$4 sm:$0x3]  ;;  %854 = vrot.lane.b32.xlu0 %v1277_v2, %s1208_s22  ;;  %s1209_s1 = smov 125  }
  0x39   :  { %361 = vmatpush1.bf16.msra.mxu1 %v1041_v16  ;;  %v185_v42 = vrot.slane %v906_v41, %v1281_v57  ;;  %v189_v43 = vrot.slane %v906_v41, %v1286_v59  ;;  %s1210_s9 = smov 1   ;;  %s1211_s13 = smov 127   ;;  %vm889_vm2 = vcmask 7168   ;;  %vm898_vm3 = vcmask 15368  }
  0x3a   :  { %362 = vmatprep.subr.bf16.mxu1 %v1042_v17  ;;  %877 = vrot.lane.b32.xlu1 %v1277_v2, %s1210_s9 }
  0x3b   :  { %621 = vmatpush1.bf16.msra.mxu0 %v1081_v44 }
  0x3c   :  { %622 = vmatprep.subr.bf16.mxu0 %v1086_v45  ;;  %850 = vrot.lane.b32.xlu0 %v1277_v2, %s1209_s1 }
  0x3d   :  { %363 = vmatpush1.bf16.msra.mxu1 %v1044_v18 }
  0x3e   :  { %364 = vmatprep.subr.bf16.mxu1 %v1045_v19 }
  0x3f   :  { %623 = vmatpush1.bf16.msra.mxu0 %v1084_v46 }
  0x40   :  { %624 = vmatprep.subr.bf16.mxu0 %v1089_v47 }
  0x41   :  { %365 = vmatpush1.bf16.msra.mxu1 %v1047_v20 }
  0x42   :  { %366 = vmatprep.subr.bf16.mxu1 %v1048_v21 }
  0x43   :  { %625 = vmatpush1.bf16.msra.mxu0 %v1087_v48 }
  0x44   :  { %626 = vmatprep.subr.bf16.mxu0 %v1092_v49 }
  0x45   :  { %367 = vmatpush1.bf16.msra.mxu1 %v1050_v22 }
  0x46   :  { %368 = vmatprep.subr.bf16.mxu1 %v1051_v23 }
  0x47   :  { %627 = vmatpush1.bf16.msra.mxu0 %v1090_v50 }
  0x48   :  { %628 = vmatprep.subr.bf16.mxu0 %v1095_v51 }
  0x49   :  { %369 = vmatpush1.bf16.msra.mxu1 %v1053_v24 }
  0x4a   :  { %370 = vmatprep.subr.bf16.mxu1 %v1054_v25  ;;  %v1101_v25 = vld [vmem:[#allocation4 + $0x84] ss:$8 sps:$4 sm:$0xff]  }
  0x4b   :  { %629 = vmatpush1.bf16.msra.mxu0 %v1093_v52 }
  0x4c   :  { %630 = vmatprep.subr.bf16.mxu0 %v1098_v53 }
  0x4d   :  { %371 = vmatpush1.bf16.msra.mxu1 %v1056_v26  ;;  %v1099_v26 = vld [vmem:[#allocation4 + $0x80] ss:$8 sps:$4 sm:$0xff]  }
  0x4e   :  { %372 = vmatprep.subr.bf16.mxu1 %v1057_v27  ;;  %v1104_v27 = vld [vmem:[#allocation4 + $0x94] ss:$8 sps:$4 sm:$0xff]  }
  0x4f   :  { %631 = vmatpush1.bf16.msra.mxu0 %v1096_v54 }
  0x50   :  { %632 = vmatprep.subr.bf16.mxu0 %v1101_v25  ;;  %v907_v25 = vld [vmem:[%s1369_s5 + $0x2] ss:$4 sm:$0x3] }
  0x51   :  { %373 = vmatpush1.bf16.msra.mxu1 %v1059_v28  ;;  %v1102_v28 = vld [vmem:[#allocation4 + $0x90] ss:$8 sps:$4 sm:$0xff]  }
  0x52   :  { %374 = vmatprep.subr.bf16.mxu1 %v1060_v29  ;;  %v1107_v29 = vld [vmem:[#allocation4 + $0xa4] ss:$8 sps:$4 sm:$0xff]  }
  0x53   :  { %633 = vmatpush1.bf16.msra.mxu0 %v1099_v26  ;;  %v449_v26 = vrot.slane %v907_v25, %v1281_v57 }
  0x54   :  { %634 = vmatprep.subr.bf16.mxu0 %v1104_v27  ;;  %v453_v27 = vrot.slane %v907_v25, %v1286_v59 }
  0x55   :  { %375 = vmatpush1.bf16.msra.mxu1 %v1062_v30  ;;  %v1105_v30 = vld [vmem:[#allocation4 + $0xa0] ss:$8 sps:$4 sm:$0xff]  }
  0x56   :  { %376 = vmatprep.subr.bf16.mxu1 %v1063_v31  ;;  %v1110_v31 = vld [vmem:[#allocation4 + $0xb4] ss:$8 sps:$4 sm:$0xff]  }
  0x57   :  { %635 = vmatpush1.bf16.msra.mxu0 %v1102_v28 }
  0x58   :  { %636 = vmatprep.subr.bf16.mxu0 %v1107_v29 }
  0x59   :  { %377 = vmatpush1.bf16.msra.mxu1 %v1065_v32  ;;  %v1108_v32 = vld [vmem:[#allocation4 + $0xb0] ss:$8 sps:$4 sm:$0xff]  }
  0x5a   :  { %378 = vmatprep.subr.bf16.mxu1 %v1066_v33  ;;  %v1111_v33 = vld [vmem:[#allocation4 + $0xc0] ss:$8 sps:$4 sm:$0xff]  }
  0x5b   :  { %637 = vmatpush1.bf16.msra.mxu0 %v1105_v30 }
  0x5c   :  { %638 = vmatprep.subr.bf16.mxu0 %v1110_v31 }
  0x5d   :  { %379 = vmatpush1.bf16.msra.mxu1 %v1068_v34  ;;  %v1113_v34 = vld [vmem:[#allocation4 + $0xc4] ss:$8 sps:$4 sm:$0xff]  }
  0x5e   :  { %380 = vmatprep.subr.bf16.mxu1 %v1069_v35  ;;  %v1116_v35 = vld [vmem:[#allocation4 + $0xd4] ss:$8 sps:$4 sm:$0xff]  }
  0x5f   :  { %639 = vmatpush1.bf16.msra.mxu0 %v1108_v32 }
  0x60   :  { %640 = vmatprep.subr.bf16.mxu0 %v1113_v34 }
  0x61   :  { %381 = vmatpush1.bf16.msra.mxu1 %v1071_v36  ;;  %v1114_v36 = vld [vmem:[#allocation4 + $0xd0] ss:$8 sps:$4 sm:$0xff]  }
  0x62   :  { %382 = vmatprep.subr.bf16.mxu1 %v1072_v37  ;;  %v1119_v37 = vld [vmem:[#allocation4 + $0xe4] ss:$8 sps:$4 sm:$0xff]  }
  0x63   :  { %641 = vmatpush1.bf16.msra.mxu0 %v1111_v33 }
  0x64   :  { %642 = vmatprep.subr.bf16.mxu0 %v1116_v35 }
  0x65   :  { %383 = vmatpush1.bf16.msra.mxu1 %v1074_v38  ;;  %v1117_v38 = vld [vmem:[#allocation4 + $0xe0] ss:$8 sps:$4 sm:$0xff]  }
  0x67   :  { %643 = vmatpush1.bf16.msra.mxu0 %v1114_v36 }
  0x68   :  { %644 = vmatprep.subr.bf16.mxu0 %v1119_v37 }
  0x6b   :  { %645 = vmatpush1.bf16.msra.mxu0 %v1117_v38 }
  0x6c   :  { %646 = vmatprep.subr.bf16.mxu0 %v1122_v39 }
  0x6f   :  { %647 = vmatpush1.bf16.msra.mxu0 %v1120_v40 }
  0xaa   :  { %v855_v29 = vpop.permute.xlu0 %854 }
  0xab   :  { %v857_v32 = vsub.f32 %v1277_v2, %v855_v29 }
  0xad   :  { %863 = vrot.lane.b32.xlu1 %v857_v32, %s1208_s22 }
  0xae   :  { %v851_v38 = vpop.permute.xlu0 %850 }
  0xaf   :  { %v853_v40 = vsub.f32 %v1277_v2, %v851_v38 }
  0xb1   :  { %873 = vrot.lane.b32.xlu0 %v853_v40, %s1210_s9 }
  0xff   :  { %v122_v62 = vpop.f32.mrb[0].mxu0 }
 0x100   :  { %v123_v63 = vadd.f32 %v122_v62, %v65_v60  ;;  %v124_v0 = vpop.f32.mrb[1].mxu0 }
 0x101   :  { %v125_v1 = vadd.f32 %v124_v0, %v69_v61  ;;  %v126_v3 = vpop.f32.mrb[2].mxu0 }
 0x102   :  { %v129_v4 = vmul.f32 %v123_v63, %v123_v63  ;;  %v127_v5 = vpop.f32.mrb[3].mxu0  ;;  %v139_v17 = vmul.f32 0.5, %v123_v63 }
 0x103   :  { %v130_v6 = vmul.f32 %v125_v1, %v125_v1  ;;  %v140_v19 = vmul.f32 0.5, %v125_v1 }
 0x104   :  { %v131_v7 = vmul.f32 %v129_v4, %v123_v63 }
 0x105   :  { %v132_v8 = vmul.f32 %v130_v6, %v125_v1 }
 0x106   :  { %v133_v9 = vmul.f32 0.044715, %v131_v7 }
 0x107   :  { %v134_v10 = vmul.f32 0.044715, %v132_v8 }
 0x108   :  { %v135_v11 = vadd.f32 %v133_v9, %v123_v63  ;;  %v1123_v9 = vld [vmem:[%s1368_s4 + $0x40] sm:$0xff]  }
 0x109   :  { %v136_v12 = vadd.f32 %v134_v10, %v125_v1  ;;  %v1124_v10 = vld [vmem:[%s1368_s4] sm:$0xff]   ;;  %994 = vmatprep.subr.bf16.mxu1 %v1123_v9 }
 0x10a   :  { %v137_v13 = vmul.f32 0.7978846, %v135_v11  ;;  %v1125_v11 = vld [vmem:[%s1368_s4 + $0x48] sm:$0xff]  }
 0x10b   :  { %v138_v14 = vmul.f32 0.7978846, %v136_v12  ;;  %v1126_v12 = vld [vmem:[%s1368_s4 + $0x8] sm:$0xff]  }
 0x10c   :  { %1139 = vtanh.f32 %v137_v13  ;;  %v1127_v13 = vld [vmem:[%s1368_s4 + $0x50] sm:$0xff]  }
 0x10d   :  { %1141 = vtanh.f32 %v138_v14  ;;  %v1128_v14 = vld [vmem:[%s1368_s4 + $0x10] sm:$0xff]  }
 0x116   :  { %v1140_v15 = vpop.eup %1139 }
 0x117   :  { %v1142_v16 = vpop.eup %1141  ;;  %v143_v18 = vadd.f32 1.0, %v1140_v15  ;;  %v1129_v15 = vld [vmem:[%s1368_s4 + $0x58] sm:$0xff]  }
 0x118   :  { %v144_v20 = vadd.f32 1.0, %v1142_v16  ;;  %v1130_v16 = vld [vmem:[%s1368_s4 + $0x18] sm:$0xff]  }
 0x119   :  { %v145_v21 = vmul.f32 %v143_v18, %v139_v17  ;;  %v1131_v17 = vld [vmem:[%s1368_s4 + $0x60] sm:$0xff]  }
 0x11a   :  { %v146_v22 = vmul.f32 %v144_v20, %v140_v19  ;;  %v1132_v18 = vld [vmem:[%s1368_s4 + $0x20] sm:$0xff]   ;;  %v1133_v19 = vld [vmem:[%s1368_s4 + $0x68] sm:$0xff]  }
 0x11b   :  { %v147_v24 = vpack.c.bf16 %v145_v21, %v145_v21  ;;  %v1134_v20 = vld [vmem:[%s1368_s4 + $0x28] sm:$0xff]   ;;  %v1135_v21 = vld [vmem:[%s1368_s4 + $0x70] sm:$0xff]  }
 0x11c   :  { %v148_v23 = vpack.c.bf16 %v146_v22, %v146_v22  ;;  %v1136_v22 = vld [vmem:[%s1368_s4 + $0x30] sm:$0xff]  }
 0x11e   :  { %384 = vmatprep.mubr.bf16.mxu1 %v148_v23  ;;  %v1137_v23 = vld [vmem:[%s1368_s4 + $0x78] sm:$0xff]  }
 0x11f   :  { %385 = vmatmul.mubr.bf16.vlgmr.msra.gmra.mrb[0].mxu1 %v147_v24  ;;  %v1138_v24 = vld [vmem:[%s1368_s4 + $0x38] sm:$0xff]  }
 0x120   :  { %995 = vmatpush3.bf16.msra.mxu1 %v1124_v10 }
 0x121   :  { %996 = vmatprep.subr.bf16.mxu1 %v1125_v11 }
 0x124   :  { %997 = vmatpush3.bf16.msra.mxu1 %v1126_v12 }
 0x125   :  { %998 = vmatprep.subr.bf16.mxu1 %v1127_v13 }
 0x128   :  { %999 = vmatpush3.bf16.msra.mxu1 %v1128_v14 }
 0x129   :  { %1000 = vmatprep.subr.bf16.mxu1 %v1129_v15 }
 0x12c   :  { %1001 = vmatpush3.bf16.msra.mxu1 %v1130_v16 }
 0x12d   :  { %1002 = vmatprep.subr.bf16.mxu1 %v1131_v17 }
 0x130   :  { %1003 = vmatpush3.bf16.msra.mxu1 %v1132_v18 }
 0x131   :  { %1004 = vmatprep.subr.bf16.mxu1 %v1133_v19 }
 0x134   :  { %1005 = vmatpush3.bf16.msra.mxu1 %v1134_v20 }
 0x135   :  { %1006 = vmatprep.subr.bf16.mxu1 %v1135_v21 }
 0x138   :  { %1007 = vmatpush3.bf16.msra.mxu1 %v1136_v22 }
 0x139   :  { %1008 = vmatprep.subr.bf16.mxu1 %v1137_v23 }
 0x13c   :  { %1009 = vmatpush3.bf16.msra.mxu1 %v1138_v24 }
 0x1f2   :  { %v386_v44 = vpop.f32.mrb[0].mxu1 }
 0x1f3   :  { %v387_v45 = vadd.f32 %v386_v44, %v185_v42  ;;  %v388_v46 = vpop.f32.mrb[1].mxu1 }
 0x1f4   :  { %v389_v47 = vadd.f32 %v388_v46, %v189_v43  ;;  %v390_v48 = vpop.f32.mrb[2].mxu1 }
 0x1f5   :  { %v393_v49 = vmul.f32 %v387_v45, %v387_v45  ;;  %v391_v50 = vpop.f32.mrb[3].mxu1  ;;  %v403_v0 = vmul.f32 0.5, %v387_v45 }
 0x1f6   :  { %v394_v51 = vmul.f32 %v389_v47, %v389_v47  ;;  %v404_v3 = vmul.f32 0.5, %v389_v47 }
 0x1f7   :  { %v395_v52 = vmul.f32 %v393_v49, %v387_v45 }
 0x1f8   :  { %v396_v53 = vmul.f32 %v394_v51, %v389_v47 }
 0x1f9   :  { %v397_v54 = vmul.f32 0.044715, %v395_v52 }
 0x1fa   :  { %v398_v55 = vmul.f32 0.044715, %v396_v53 }
 0x1fb   :  { %v399_v56 = vadd.f32 %v397_v54, %v387_v45 }
 0x1fc   :  { %v400_v58 = vadd.f32 %v398_v55, %v389_v47 }
 0x1fd   :  { %v401_v60 = vmul.f32 0.7978846, %v399_v56  ;;  %v976_v56 = vld [vmem:[%s1369_s5 + $0x3] ss:$0 sm:$0xff] }
 0x1fe   :  { %v402_v61 = vmul.f32 0.7978846, %v400_v58 }
 0x1ff   :  { %1143 = vtanh.f32 %v401_v60 }
 0x200   :  { %1145 = vtanh.f32 %v402_v61 }
 0x209   :  { %v1144_v62 = vpop.eup %1143 }
 0x20a   :  { %v1146_v63 = vpop.eup %1145  ;;  %v407_v1 = vadd.f32 1.0, %v1144_v62 }
 0x20b   :  { %v408_v4 = vadd.f32 1.0, %v1146_v63  ;;  %v878_v63 = vpop.permute.xlu1 %877 }
 0x20c   :  { %v409_v5 = vmul.f32 %v407_v1, %v403_v0 }
 0x20d   :  { %v410_v6 = vmul.f32 %v408_v4, %v404_v3 }
 0x20e   :  { %v411_v8 = vpack.c.bf16 %v409_v5, %v409_v5 }
 0x20f   :  { %v412_v7 = vpack.c.bf16 %v410_v6, %v410_v6  ;;  %v864_v5 = vpop.permute.xlu1 %863 }
 0x211   :  { %648 = vmatprep.mubr.bf16.mxu0 %v412_v7 }
 0x212   :  { %649 = vmatmul.mubr.bf16.vlgmr.msra.gmra.mrb[4].mxu0 %v411_v8  ;;  %v874_v8 = vpop.permute.xlu0 %873 }
 0x2e5   :  { %v650_v28 = vpop.f32.mrb[4].mxu0 }
 0x2e6   :  { %v651_v30 = vadd.f32 %v650_v28, %v449_v26  ;;  %v652_v31 = vpop.f32.mrb[5].mxu0 }
 0x2e7   :  { %v653_v33 = vadd.f32 %v652_v31, %v453_v27  ;;  %v654_v34 = vpop.f32.mrb[6].mxu0 }
 0x2e8   :  { %v657_v35 = vmul.f32 %v651_v30, %v651_v30  ;;  %v655_v36 = vpop.f32.mrb[7].mxu0  ;;  %v667_v48 = vmul.f32 0.5, %v651_v30 }
 0x2e9   :  { %v658_v37 = vmul.f32 %v653_v33, %v653_v33  ;;  %v668_v50 = vmul.f32 0.5, %v653_v33 }
 0x2ea   :  { %v659_v39 = vmul.f32 %v657_v35, %v651_v30 }
 0x2eb   :  { %v660_v57 = vmul.f32 %v658_v37, %v653_v33 }
 0x2ec   :  { %v661_v41 = vmul.f32 0.044715, %v659_v39 }
 0x2ed   :  { %v662_v59 = vmul.f32 0.044715, %v660_v57 }
 0x2ee   :  { %v663_v42 = vadd.f32 %v661_v41, %v651_v30 }
 0x2ef   :  { %v664_v43 = vadd.f32 %v662_v59, %v653_v33 }
 0x2f0   :  { %v665_v44 = vmul.f32 0.7978846, %v663_v42 }
 0x2f1   :  { %v666_v45 = vmul.f32 0.7978846, %v664_v43 }
 0x2f2   :  { %1147 = vtanh.f32 %v665_v44 }
 0x2f3   :  { %1149 = vtanh.f32 %v666_v45 }
 0x2fc   :  { %v1148_v46 = vpop.eup %1147 }
 0x2fd   :  { %v1150_v47 = vpop.eup %1149  ;;  %v671_v49 = vadd.f32 1.0, %v1148_v46 }
 0x2fe   :  { %v672_v51 = vadd.f32 1.0, %v1150_v47 }
 0x2ff   :  { %v673_v52 = vmul.f32 %v671_v49, %v667_v48 }
 0x300   :  { %v674_v53 = vmul.f32 %v672_v51, %v668_v50 }
 0x301   :  { %v675_v2 = vpack.c.bf16 %v673_v52, %v673_v52 }
 0x302   :  { %v676_v54 = vpack.c.bf16 %v674_v53, %v674_v53 }
 0x304   :  { %841 = vmatprep.mubr.bf16.mxu1 %v676_v54 }
 0x305   :  { %842 = vmatmul.mubr.bf16.vlgmr.msra.gmra.mrb[4].mxu1 %v675_v2 }
 0x3d8   :  { %v1010_v55 = vpop.f32.mrb[4].mxu1 }
 0x3d9   :  { %v1011_v58 = vpop.f32.mrb[5].mxu1 }
 0x3da   :  { %v1012_v60 = vadd.f32 %v1011_v58, %v1010_v55  ;;  %v1013_v61 = vpop.f32.mrb[6].mxu1 }
 0x3db   :  { %v1014_v62 = vpop.f32.mrb[7].mxu1 }
 0x3dc   :  { %v844_v0 = vadd.f32 %v1012_v60, %v976_v56 }
 0x3de   :  { %v880_v1 = vmul.f32 %v878_v63, %v844_v0  ;;  %v858_v3 = vmul.f32 %v844_v0, %v844_v0  ;;  %v861_v12 = vmul.f32 %v855_v29, %v844_v0 }
 0x3e0   :  { %882 = vrot.lane.b32.xlu1 %v880_v1, %s1211_s13  ;;  %v859_v4 = vsub.f32 0.0, %v858_v3 }
 0x3e2   :  { %v993_v6 = vadd.f32 -0.6, %v859_v4  ;;  %v876_v9 = vmul.f32 %v874_v8, %v859_v4 }
 0x3e4   :  { %v866_v7 = vmul.f32 %v993_v6, %v864_v5 }
 0x3e6   :  { %868 = vrot.lane.b32.xlu0 %v866_v7, %s1211_s13 }
 0x452   :  { %v883_v10 = vpop.permute.xlu1 %882 }
 0x453   :  { %v885_v11 = vadd.f32 %v883_v10, %v876_v9 }
 0x455   :  { %1151 = vtanh.f32 %v885_v11 }
 0x458   :  { %v869_v13 = vpop.permute.xlu0 %868 }
 0x459   :  { %v871_v14 = vadd.f32 %v869_v13, %v861_v12 }
 0x45b   :  { %1153 = vtanh.f32 %v871_v14 }
 0x45f   :  { %v1152_v15 = vpop.eup %1151 }
 0x460   :  { %v892_v16 = vmul.f32 0.5, %v1152_v15 }
 0x462   :  { %895 = vrot.lane.b32.xlu1 %v892_v16, %s1211_s13 }
 0x465   :  { %v1154_v17 = vpop.eup %1153 }
 0x466   :  { %v887_v18 = vmul.f32 3.0, %v1154_v17 }
 0x468   :  { %890 = vst.msk [vmem:[%s1370_s6] sm:$0xff] %vm889_vm2, %v887_v18 }
 0x4d4   :  { %v896_v19 = vpop.permute.xlu1 %895 }
 0x4d5   :  { %899 = vst.msk [vmem:[%s1370_s6] sm:$0xff] %vm898_vm3, %v896_v19 }
 0x4d6   :  { %904 = vsyncpa [#allocation3], 1 }
 0x4d7   :  { %905 = vsyncpa [#allocation5], 1 }

</bundles_post_ra>
